<compile_context>
chip_gen: v5e
topology: v5e:2x2
jax: 0.10.0
libtpu: 0.0.40
codegen_flags: <defaults>
</compile_context>

<pallas_src>
import functools

import jax
import jax.numpy as jnp
from jax.experimental import pallas as pl
from jax.experimental.pallas import tpu as pltpu

LANE = 128


def mlp_kernel(x_ref, w1_ref, b1_ref, w2_ref, b2_ref, w3_ref, b3_ref, o_ref):
    # Cast x to bf16 in-kernel (input HBM stream stays f32 and unpadded).
    x = x_ref[...].astype(jnp.bfloat16)
    # Layer 1: bf16 MXU matmul, f32 accumulation; bias + ReLU in f32 (VPU).
    h = jnp.dot(x, w1_ref[...], preferred_element_type=jnp.float32)
    h = jnp.maximum(h + b1_ref[...], 0.0)
    # Layer 2.
    h = jnp.dot(h.astype(jnp.bfloat16), w2_ref[...],
                preferred_element_type=jnp.float32)
    h = jnp.maximum(h + b2_ref[...], 0.0)
    # Output layer: narrow (D_out) output, f32 store.
    out = jnp.dot(h.astype(jnp.bfloat16), w3_ref[...],
                  preferred_element_type=jnp.float32)
    o_ref[...] = (out + b3_ref[...]).astype(o_ref.dtype)


def _round_up(x, m):
    return ((x + m - 1) // m) * m


def prepare_params(params):
    """One-time weight prep: pad hidden dims to 128 lanes, cast weights to bf16.

    Input-feature dim of W1 and output dim of W3 are left unpadded so the
    kernel's x / output HBM streams stay narrow.  Biases stay f32.
    """
    (w1, b1), (w2, b2), (w3, b3) = params
    d_in, h1 = w1.shape
    h2 = w2.shape[1]
    d_out = w3.shape[1]
    h1_p = _round_up(h1, LANE)
    h2_p = _round_up(h2, LANE)

    def pad2(a, r, c):
        return jnp.pad(a, ((0, r - a.shape[0]), (0, c - a.shape[1])))

    w1_p = pad2(w1, d_in, h1_p).astype(jnp.bfloat16)
    w2_p = pad2(w2, h1_p, h2_p).astype(jnp.bfloat16)
    w3_p = pad2(w3, h2_p, d_out).astype(jnp.bfloat16)
    b1_p = pad2(b1.reshape(1, -1), 1, h1_p).astype(jnp.float32)
    b2_p = pad2(b2.reshape(1, -1), 1, h2_p).astype(jnp.float32)
    b3_p = b3.reshape(1, -1).astype(jnp.float32)
    return (w1_p, b1_p, w2_p, b2_p, w3_p, b3_p)


@functools.partial(jax.jit, static_argnames=("max_tile_b",))
def mlp_forward(x, prepared, *, max_tile_b=512):
    """Fused 3-layer MLP forward as one Pallas kernel, tiled over the batch."""
    w1_p, b1_p, w2_p, b2_p, w3_p, b3_p = prepared
    B, D_in = x.shape
    assert w1_p.shape[0] == D_in
    H1_p = w1_p.shape[1]
    H2_p = w2_p.shape[1]
    D_out = w3_p.shape[1]

    # Batch tiling: pad rows to a multiple of 16.  Tiny batches run in a single
    # grid step; large batches are split into >= 2 tiles (capped at max_tile_b)
    # so the "parallel" batch axis can be sharded across v7x's two TensorCores.
    B_pad = _round_up(B, 16)
    if B_pad <= 64:
        tile_b = B_pad
    else:
        tile_b = min(max_tile_b, _round_up(pl.cdiv(B_pad, 2), 16))
    B_pad = _round_up(B_pad, tile_b)
    grid = (B_pad // tile_b,)

    x_p = x if B_pad == B else jnp.pad(x, ((0, B_pad - B), (0, 0)))

    def full(shape):
        # Whole-array, grid-invariant block (same block every step -> no re-DMA).
        return pl.BlockSpec(shape, lambda i: tuple(0 for _ in shape))

    flops = 2 * B_pad * (D_in * H1_p + H1_p * H2_p + H2_p * D_out)
    bytes_accessed = (
        4 * B_pad * D_in                                    # f32 x (unpadded)
        + 2 * (w1_p.size + w2_p.size + w3_p.size)           # bf16 weights
        + 4 * (b1_p.size + b2_p.size + b3_p.size)           # f32 biases
        + 4 * B_pad * D_out                                 # f32 narrow output
    )
    cost = pl.CostEstimate(flops=flops, transcendentals=0,
                           bytes_accessed=bytes_accessed)

    out = pl.pallas_call(
        mlp_kernel,
        out_shape=jax.ShapeDtypeStruct((B_pad, D_out), jnp.float32),
        grid_spec=pltpu.PrefetchScalarGridSpec(
            num_scalar_prefetch=0,
            grid=grid,
            in_specs=[
                pl.BlockSpec((tile_b, D_in), lambda i: (i, 0)),  # x tile (unpadded)
                full((D_in, H1_p)),    # W1
                full((1, H1_p)),       # b1
                full((H1_p, H2_p)),    # W2
                full((1, H2_p)),       # b2
                full((H2_p, D_out)),   # W3
                full((1, D_out)),      # b3
            ],
            out_specs=pl.BlockSpec((tile_b, D_out), lambda i: (i, 0)),
        ),
        compiler_params=pltpu.CompilerParams(
            dimension_semantics=("parallel",),
        ),
        cost_estimate=cost,
    )(x_p, w1_p, b1_p, w2_p, b2_p, w3_p, b3_p)

    # Drop batch padding only (output is already narrow in the feature dim).
    return out[:B]


def init_params(key, input_dim, hidden_sizes):
    """Deterministic init mimicking torch.nn.Linear (uniform +/- 1/sqrt(fan_in)).

    Weights are stored as [in, out] for the kernel; biases as [1, out].
    """
    dims = [input_dim] + list(hidden_sizes) + [2]
    params = []
    for i in range(len(dims) - 1):
        fan_in, fan_out = dims[i], dims[i + 1]
        key, kw, kb = jax.random.split(key, 3)
        bound = 1.0 / jnp.sqrt(fan_in)
        w = jax.random.uniform(kw, (fan_in, fan_out), jnp.float32, -bound, bound)
        b = jax.random.uniform(kb, (1, fan_out), jnp.float32, -bound, bound)
        params.append((w, b))
    return params


def mlp_reference(x, params):
    (w1, b1), (w2, b2), (w3, b3) = params
    h = jnp.maximum(x @ w1 + b1, 0.0)
    h = jnp.maximum(h @ w2 + b2, 0.0)
    return h @ w3 + b3


if __name__ == "__main__":
    key = jax.random.PRNGKey(0)

    input_dim = 16
    hidden_sizes = [32, 32]
    params = init_params(key, input_dim, hidden_sizes)
    prepared = prepare_params(params)   # one-time pad + bf16 cast of weights

    # Case 1: tiny batch -> single grid step, whole batch in one invocation.
    key, kx = jax.random.split(key)
    x = jax.random.normal(kx, (16, input_dim), dtype=jnp.float32)
    y = jax.block_until_ready(mlp_forward(x, prepared))
    y_ref = mlp_reference(x, params)
    assert y.shape == (16, 2), y.shape
    # bf16 MXU operands with f32 accumulation -> compare at bf16 tolerance.
    assert jnp.allclose(y, y_ref, atol=5e-2, rtol=5e-2), float(
        jnp.max(jnp.abs(y - y_ref)))

    # Case 2: non-multiple batch -> padded batch, >= 2 parallel grid steps.
    key, kx2 = jax.random.split(key)
    x2 = jax.random.normal(kx2, (300, input_dim), dtype=jnp.float32)
    y2 = jax.block_until_ready(mlp_forward(x2, prepared))
    y2_ref = mlp_reference(x2, params)
    assert y2.shape == (300, 2), y2.shape
    assert jnp.allclose(y2, y2_ref, atol=5e-2, rtol=5e-2), float(
        jnp.max(jnp.abs(y2 - y2_ref)))

    print("KERNEL_OK")
</pallas_src>

<mosaic_0001>
module attributes {stable_mosaic.version = 11 : i64} {
  func.func @mlp_kernel(%arg0: i32, %arg1: memref<16x16xf32, #tpu.memory_space<vmem>>, %arg2: memref<16x128xbf16, #tpu.memory_space<vmem>>, %arg3: memref<1x128xf32, #tpu.memory_space<vmem>>, %arg4: memref<128x128xbf16, #tpu.memory_space<vmem>>, %arg5: memref<1x128xf32, #tpu.memory_space<vmem>>, %arg6: memref<128x2xbf16, #tpu.memory_space<vmem>>, %arg7: memref<1x2xf32, #tpu.memory_space<vmem>>, %arg8: memref<16x2xf32, #tpu.memory_space<vmem>>) attributes {dimension_semantics = [#tpu.dimension_semantics<parallel>], iteration_bounds = array<i64: 1>, scalar_prefetch = 0 : i64, scratch_operands = 0 : i64, tpu.core_type = #tpu.core_type<tc>, window_params = [{transform_indices = @transform_0, window_bounds = array<i64: 16, 16>}, {pipeline_mode = #tpu.pipeline_mode<synchronous>, transform_indices = @transform_1, window_bounds = array<i64: 16, 128>}, {pipeline_mode = #tpu.pipeline_mode<synchronous>, transform_indices = @transform_2, window_bounds = array<i64: 1, 128>}, {pipeline_mode = #tpu.pipeline_mode<synchronous>, transform_indices = @transform_3, window_bounds = array<i64: 128, 128>}, {pipeline_mode = #tpu.pipeline_mode<synchronous>, transform_indices = @transform_4, window_bounds = array<i64: 1, 128>}, {pipeline_mode = #tpu.pipeline_mode<synchronous>, transform_indices = @transform_5, window_bounds = array<i64: 128, 2>}, {pipeline_mode = #tpu.pipeline_mode<synchronous>, transform_indices = @transform_6, window_bounds = array<i64: 1, 2>}, {transform_indices = @transform_7, window_bounds = array<i64: 16, 2>}]} {
    %c0 = arith.constant 0 : index
    %c0_0 = arith.constant 0 : index
    %0 = vector.load %arg1[%c0, %c0_0] : memref<16x16xf32, #tpu.memory_space<vmem>>, vector<16x16xf32>
    %1 = arith.truncf %0 : vector<16x16xf32> to vector<16x16xbf16>
    %c0_1 = arith.constant 0 : index
    %c0_2 = arith.constant 0 : index
    %2 = vector.load %arg2[%c0_1, %c0_2] : memref<16x128xbf16, #tpu.memory_space<vmem>>, vector<16x128xbf16>
    %cst = arith.constant dense<0.000000e+00> : vector<16x128xf32>
    %3 = tpu.matmul %1, %2, %cst {dimension_numbers = #tpu.dot_dimension_numbers<[1], [0], [0], [1], [0, 0, 1, 1], [], []>} : vector<16x16xbf16>, vector<16x128xbf16>, vector<16x128xf32> -> vector<16x128xf32>
    %c0_3 = arith.constant 0 : index
    %c0_4 = arith.constant 0 : index
    %4 = vector.load %arg3[%c0_3, %c0_4] : memref<1x128xf32, #tpu.memory_space<vmem>>, vector<1x128xf32>
    %5 = vector.broadcast %4 : vector<1x128xf32> to vector<16x128xf32>
    %6 = arith.addf %3, %5 : vector<16x128xf32>
    %cst_5 = arith.constant 0.000000e+00 : f32
    %7 = vector.broadcast %cst_5 : f32 to vector<16x128xf32>
    %8 = arith.maximumf %6, %7 : vector<16x128xf32>
    %9 = arith.truncf %8 : vector<16x128xf32> to vector<16x128xbf16>
    %c0_6 = arith.constant 0 : index
    %c0_7 = arith.constant 0 : index
    %10 = vector.load %arg4[%c0_6, %c0_7] : memref<128x128xbf16, #tpu.memory_space<vmem>>, vector<128x128xbf16>
    %cst_8 = arith.constant dense<0.000000e+00> : vector<16x128xf32>
    %11 = tpu.matmul %9, %10, %cst_8 {dimension_numbers = #tpu.dot_dimension_numbers<[1], [0], [0], [1], [0, 0, 1, 1], [], []>} : vector<16x128xbf16>, vector<128x128xbf16>, vector<16x128xf32> -> vector<16x128xf32>
    %c0_9 = arith.constant 0 : index
    %c0_10 = arith.constant 0 : index
    %12 = vector.load %arg5[%c0_9, %c0_10] : memref<1x128xf32, #tpu.memory_space<vmem>>, vector<1x128xf32>
    %13 = vector.broadcast %12 : vector<1x128xf32> to vector<16x128xf32>
    %14 = arith.addf %11, %13 : vector<16x128xf32>
    %cst_11 = arith.constant 0.000000e+00 : f32
    %15 = vector.broadcast %cst_11 : f32 to vector<16x128xf32>
    %16 = arith.maximumf %14, %15 : vector<16x128xf32>
    %17 = arith.truncf %16 : vector<16x128xf32> to vector<16x128xbf16>
    %c0_12 = arith.constant 0 : index
    %c0_13 = arith.constant 0 : index
    %18 = vector.load %arg6[%c0_12, %c0_13] : memref<128x2xbf16, #tpu.memory_space<vmem>>, vector<128x2xbf16>
    %cst_14 = arith.constant dense<0.000000e+00> : vector<16x2xf32>
    %19 = tpu.matmul %17, %18, %cst_14 {dimension_numbers = #tpu.dot_dimension_numbers<[1], [0], [0], [1], [0, 0, 1, 1], [], []>} : vector<16x128xbf16>, vector<128x2xbf16>, vector<16x2xf32> -> vector<16x2xf32>
    %c0_15 = arith.constant 0 : index
    %c0_16 = arith.constant 0 : index
    %20 = vector.load %arg7[%c0_15, %c0_16] : memref<1x2xf32, #tpu.memory_space<vmem>>, vector<1x2xf32>
    %21 = vector.broadcast %20 : vector<1x2xf32> to vector<16x2xf32>
    %22 = arith.addf %19, %21 : vector<16x2xf32>
    %c0_17 = arith.constant 0 : index
    %c0_18 = arith.constant 0 : index
    %23 = vector.load %arg8[%c0_17, %c0_18] : memref<16x2xf32, #tpu.memory_space<vmem>>, vector<16x2xf32>
    tpu.vector_store %arg8[%c0_17, %c0_18], %22 {strides = array<i32>} : memref<16x2xf32, #tpu.memory_space<vmem>>, vector<16x2xf32>,
    return
  }
  func.func @transform_0(%arg0: i32) -> (i32, i32) {
    %c0_i32 = arith.constant 0 : i32
    %c0_i32_0 = arith.constant 0 : i32
    return %arg0, %c0_i32 : i32, i32
  }
  func.func @transform_1(%arg0: i32) -> (i32, i32) {
    %c0_i32 = arith.constant 0 : i32
    %c0_i32_0 = arith.constant 0 : i32
    %c0_i32_1 = arith.constant 0 : i32
    return %c0_i32, %c0_i32_0 : i32, i32
  }
  func.func @transform_2(%arg0: i32) -> (i32, i32) {
    %c0_i32 = arith.constant 0 : i32
    %c0_i32_0 = arith.constant 0 : i32
    %c0_i32_1 = arith.constant 0 : i32
    return %c0_i32, %c0_i32_0 : i32, i32
  }
  func.func @transform_3(%arg0: i32) -> (i32, i32) {
    %c0_i32 = arith.constant 0 : i32
    %c0_i32_0 = arith.constant 0 : i32
    %c0_i32_1 = arith.constant 0 : i32
    return %c0_i32, %c0_i32_0 : i32, i32
  }
  func.func @transform_4(%arg0: i32) -> (i32, i32) {
    %c0_i32 = arith.constant 0 : i32
    %c0_i32_0 = arith.constant 0 : i32
    %c0_i32_1 = arith.constant 0 : i32
    return %c0_i32, %c0_i32_0 : i32, i32
  }
  func.func @transform_5(%arg0: i32) -> (i32, i32) {
    %c0_i32 = arith.constant 0 : i32
    %c0_i32_0 = arith.constant 0 : i32
    %c0_i32_1 = arith.constant 0 : i32
    return %c0_i32, %c0_i32_0 : i32, i32
  }
  func.func @transform_6(%arg0: i32) -> (i32, i32) {
    %c0_i32 = arith.constant 0 : i32
    %c0_i32_0 = arith.constant 0 : i32
    %c0_i32_1 = arith.constant 0 : i32
    return %c0_i32, %c0_i32_0 : i32, i32
  }
  func.func @transform_7(%arg0: i32) -> (i32, i32) {
    %c0_i32 = arith.constant 0 : i32
    %c0_i32_0 = arith.constant 0 : i32
    return %arg0, %c0_i32 : i32, i32
  }
}

</mosaic_0001>

<bundles_post_ra>
// kernel: mlp_forward.1
= control target key start
LH: loop header
LB: loop body
LE: loop exit
PB: predicated region body
PF: predicated region fallthrough
CT: control target
= control target key end

     0   :  { %12 = vsyncpa [#allocation3], 0  ;;  %s533_s0 = inlined_call_operand.hbm [shape: f32[16,16], index: 0, kind: input, shape index: {}]   ;;  %s534_s1 = inlined_call_operand.hbm [shape: bf16[16,128], index: 1, kind: input, shape index: {}]   ;;  %s535_s2 = inlined_call_operand.vmem [shape: f32[1,128], index: 2, kind: input, shape index: {}]   ;;  %s536_s3 = inlined_call_operand.vmem [shape: bf16[128,128], index: 3, kind: input, shape index: {}]   ;;  %s537_s4 = inlined_call_operand.vmem [shape: f32[1,128], index: 4, kind: input, shape index: {}]   ;;  %s538_s5 = inlined_call_operand.vmem [shape: bf16[128,2], index: 5, kind: input, shape index: {}]   ;;  %s539_s6 = inlined_call_operand.vmem [shape: f32[1,2], index: 6, kind: input, shape index: {}]   ;;  %s540_s7 = inlined_call_operand.vmem [shape: f32[16,2], index: 7, kind: output, shape index: {}]  }
   0x1   :  { %s18_s26 = sshll.u32 %s533_s0, 4  ;;  %s19_s26 = int_to_ptr.hbm [resolvable:$true] %s18_s26 }
   0x2   :  { %13 = vsyncpa [#allocation5], 0  ;;  %s418_s27 = smov [#allocation2]   ;;  %s31_s8 = sshll.u32 %s534_s1, 4  ;;  %s32_s8 = int_to_ptr.hbm [resolvable:$true] %s31_s8 }
   0x3   :  { %s20_s28 = sshll.u32 %s418_s27, 4  ;;  %s419_s9 = smov 128   ;;  %s21_s28 = int_to_ptr.vmem [resolvable:$true] %s20_s28 }
   0x4   :  { %s420_s10 = smov 8   ;;  %s421_s11 = smov [#allocation4]  }
   0x5   :  { %26 = dma.hbm_to_vmem [thread:$0]  %s19_s26, 256, %s21_s28, [#allocation3], %s419_s9, %s419_s9, %s420_s10  }
   0x6   :  { %s33_s12 = sshll.u32 %s421_s11, 4  ;;  %s422_s13 = smov 64   ;;  %s34_s12 = int_to_ptr.vmem [resolvable:$true] %s33_s12 }
   0x7   :  { %s423_s14 = smov 4  }
   0x8   :  { %39 = dma.hbm_to_vmem [thread:$0]  %s32_s8, 128, %s34_s12, [#allocation5], %s422_s13, %s422_s13, %s423_s14  }
   0x9   :  { %414 = dma.done.wait [#allocation3], 256  }
   0xa   :  { %415 = vsyncadd [#allocation3], 4294967040 }
   0xb   :  { %416 = dma.done.wait [#allocation5], 128  }
   0xc   :  { %417 = vsyncadd [#allocation5], 4294967168  ;;  %v340_v0 = vld [vmem:[#allocation4] sm:$0xff]  ;;  %v59_v1 = vld [vmem:[#allocation2] sm:$0xff]  ;;  %vm74_vm0 = vcmask 130048   ;;  %vm262_vm1 = vcmask 15360  }
   0xd   :  { %v60_v2 = vld [vmem:[#allocation2 + $0x8] sm:$0xff]  ;;  %v348_v4 = vld [vmem:[%s536_s3 + $0x38] sm:$0xff]  ;;  %85 = vmatpush.bf16.msra.mxu0 %v340_v0  ;;  %v347_v5 = vld [vmem:[%s536_s3 + $0x30] sm:$0xff] }
   0xe   :  { %v61_v3 = vpack.c.bf16 %v60_v2, %v59_v1  ;;  %163 = vmatpush.bf16.msra.mxu1 %v348_v4  ;;  %v346_v6 = vld [vmem:[%s536_s3 + $0x28] sm:$0xff]  ;;  %v345_v7 = vld [vmem:[%s536_s3 + $0x20] sm:$0xff]  ;;  %v344_v8 = vld [vmem:[%s536_s3 + $0x18] sm:$0xff] }
   0xf   :  { %v343_v9 = vld [vmem:[%s536_s3 + $0x10] sm:$0xff]  ;;  %v342_v10 = vld [vmem:[%s536_s3 + $0x8] sm:$0xff]  ;;  %v341_v11 = vld [vmem:[%s536_s3] sm:$0xff] }
  0x10   :  { %275 = vmatmul.msk.bf16.vlgmr.msra.gmra.mxu0 %vm74_vm0, %v61_v3  ;;  %v356_v12 = vld [vmem:[%s538_s5 + $0x38] sm:$0xff]  ;;  %v355_v13 = vld [vmem:[%s538_s5 + $0x30] sm:$0xff]  ;;  %v354_v14 = vld [vmem:[%s538_s5 + $0x28] sm:$0xff] }
  0x11   :  { %248 = vmatpush.bf16.msra.mxu2 %v356_v12  ;;  %v353_v15 = vld [vmem:[%s538_s5 + $0x20] sm:$0xff]  ;;  %v352_v24 = vld [vmem:[%s538_s5 + $0x18] sm:$0xff]  ;;  %v351_v25 = vld [vmem:[%s538_s5 + $0x10] sm:$0xff] }
  0x12   :  { %164 = vmatpush.bf16.msra.mxu1 %v347_v5  ;;  %v363_v17 = vld [vmem:[%s535_s2] ss:$0 sm:$0xff]  ;;  %v350_v26 = vld [vmem:[%s538_s5 + $0x8] sm:$0xff] }
  0x13   :  { %v349_v27 = vld [vmem:[%s538_s5] sm:$0xff] }
  0x14   :  { %v364_v29 = vld [vmem:[%s537_s4] ss:$0 sm:$0xff] }
  0x15   :  { %249 = vmatpush.bf16.msra.mxu2 %v355_v13  ;;  %v365_v36 = vld [vmem:[%s539_s6] ss:$0 sm:$0xff] }
  0x16   :  { %165 = vmatpush.bf16.msra.mxu1 %v346_v6 }
  0x19   :  { %250 = vmatpush.bf16.msra.mxu2 %v354_v14 }
  0x1a   :  { %166 = vmatpush.bf16.msra.mxu1 %v345_v7 }
  0x1d   :  { %251 = vmatpush.bf16.msra.mxu2 %v353_v15 }
  0x1e   :  { %167 = vmatpush.bf16.msra.mxu1 %v344_v8 }
  0x21   :  { %252 = vmatpush.bf16.msra.mxu2 %v352_v24 }
  0x22   :  { %168 = vmatpush.bf16.msra.mxu1 %v343_v9 }
  0x25   :  { %253 = vmatpush.bf16.msra.mxu2 %v351_v25 }
  0x26   :  { %169 = vmatpush.bf16.msra.mxu1 %v342_v10 }
  0x29   :  { %254 = vmatpush.bf16.msra.mxu2 %v350_v26 }
  0x2a   :  { %170 = vmatpush.bf16.msra.mxu1 %v341_v11 }
  0x2d   :  { %255 = vmatpush.bf16.msra.mxu2 %v349_v27 }
  0x8d   :  { %v87_v16 = vpop.f32.mrf.mxu0 }
  0x8e   :  { %v88_v18 = vadd.f32 %v363_v17, %v87_v16 }
  0x90   :  { %v92_v21 = vmax.f32 %v88_v18, 0.0 }
  0x95   :  { %v89_v19 = vpop.f32.mrf.mxu0 }
  0x96   :  { %v90_v20 = vadd.f32 %v363_v17, %v89_v19 }
  0x98   :  { %v93_v22 = vmax.f32 %v90_v20, 0.0 }
  0x9a   :  { %v94_v23 = vpack.c.bf16 %v93_v22, %v92_v21 }
  0x9c   :  { %171 = vmatmul.bf16.vlgmr.msra.gmra.mxu1 %v94_v23 }
 0x119   :  { %v172_v28 = vpop.f32.mrf.mxu1 }
 0x11a   :  { %v173_v30 = vadd.f32 %v364_v29, %v172_v28 }
 0x11c   :  { %v177_v33 = vmax.f32 %v173_v30, 0.0 }
 0x121   :  { %v174_v31 = vpop.f32.mrf.mxu1 }
 0x122   :  { %v175_v32 = vadd.f32 %v364_v29, %v174_v31 }
 0x124   :  { %v178_v34 = vmax.f32 %v175_v32, 0.0 }
 0x126   :  { %v179_v35 = vpack.c.bf16 %v178_v34, %v177_v33 }
 0x128   :  { %256 = vmatmul.bf16.vlgmr.msra.gmra.mxu2 %v179_v35 }
 0x1ab   :  { %v257_v37 = vpop.f32.mrf.mxu2 }
 0x1ac   :  { %v258_v38 = vadd.f32 %v365_v36, %v257_v37 }
 0x1ae   :  { %263 = vst.msk [vmem:[%s540_s7] sm:$0xff] %vm262_vm1, %v258_v38 }
 0x1b3   :  { %v259_v39 = vpop.f32.mrf.mxu2 }
 0x1b4   :  { %v260_v40 = vadd.f32 %v365_v36, %v259_v39 }
 0x1b6   :  { %264 = vst.msk [vmem:[%s540_s7 + $0x8] sm:$0xff] %vm262_vm1, %v260_v40 }
 0x1b7   :  { %269 = vsyncpa [#allocation3], 1 }
 0x1b8   :  { %270 = vsyncpa [#allocation5], 1 }

</bundles_post_ra>
